<compile_context>
chip_gen: v6e
topology: v6e:2x2x1
jax: 0.10.0
libtpu: 0.0.40
codegen_flags: <defaults>
</compile_context>

<pallas_src>
import jax
import jax.numpy as jnp
from jax.experimental import pallas as pl
from jax.experimental.pallas import tpu as pltpu


def classifier_kernel(x_ref, w1_ref, b1_ref, w2_ref, b2_ref, out_ref):
    # x: (BT, 10), w1: (10, 4), b1: (1, 4), w2: (4, 2), b2: (1, 2), out: (BT, 2)
    x = x_ref[...].astype(jnp.float32)

    # fc1 + relu
    h = jnp.dot(x, w1_ref[...], preferred_element_type=jnp.float32) + b1_ref[...]
    h = jnp.maximum(h, 0.0)

    # fc2
    logits = jnp.dot(h, w2_ref[...], preferred_element_type=jnp.float32) + b2_ref[...]

    # softmax over 2 classes == sigmoid of the logit difference (exact identity,
    # numerically safe: exp overflow/underflow saturates to the correct 0/1 limits).
    l0 = logits[:, 0:1]
    l1 = logits[:, 1:2]
    p1 = 1.0 / (1.0 + jnp.exp(l0 - l1))   # exp -> EUP slot
    p0 = 1.0 - p1
    out_ref[...] = jnp.concatenate([p0, p1], axis=-1).astype(out_ref.dtype)


def _round_up(a, m):
    return (a + m - 1) // m * m


def classifier_forward(x, w1, b1, w2, b2, *, max_block_rows=512):
    B, F = x.shape
    assert F == 10, f"expected 10 input features, got {F}"

    # Biases kept 2D (1, N) for TPU-friendly broadcasting inside the kernel.
    b1_2d = b1.reshape(1, -1)
    b2_2d = b2.reshape(1, -1)

    # Sublane-aligned batch tile; small batches collapse to a single grid step.
    bt = min(max_block_rows, _round_up(B, 8))
    padded_b = _round_up(B, bt)
    if padded_b != B:
        x_in = jnp.zeros((padded_b, F), x.dtype).at[:B].set(x)
    else:
        x_in = x

    out = pl.pallas_call(
        classifier_kernel,
        out_shape=jax.ShapeDtypeStruct((padded_b, 2), jnp.float32),
        grid=(padded_b // bt,),
        in_specs=[
            pl.BlockSpec((bt, 10), lambda i: (i, 0)),   # x: streamed per batch tile
            pl.BlockSpec((10, 4), lambda i: (0, 0)),    # w1: resident
            pl.BlockSpec((1, 4), lambda i: (0, 0)),     # b1: resident
            pl.BlockSpec((4, 2), lambda i: (0, 0)),     # w2: resident
            pl.BlockSpec((1, 2), lambda i: (0, 0)),     # b2: resident
        ],
        out_specs=pl.BlockSpec((bt, 2), lambda i: (i, 0)),
        compiler_params=pltpu.CompilerParams(
            dimension_semantics=("parallel",),          # lets v7x split the batch grid over 2 TCs
        ),
    )(x_in, w1, b1_2d, w2, b2_2d)
    return out[:B]


def init_params(key):
    # Deterministic init mimicking nn.Linear default (uniform in +-1/sqrt(fan_in)).
    k1, k2, k3, k4 = jax.random.split(key, 4)
    bound1 = 1.0 / jnp.sqrt(10.0)
    bound2 = 1.0 / jnp.sqrt(4.0)
    # Stored as (in_features, out_features) so the kernel does x @ W directly
    # (equivalent to PyTorch's x @ W.T with W of shape (out, in)).
    w1 = jax.random.uniform(k1, (10, 4), jnp.float32, -bound1, bound1)
    b1 = jax.random.uniform(k2, (4,), jnp.float32, -bound1, bound1)
    w2 = jax.random.uniform(k3, (4, 2), jnp.float32, -bound2, bound2)
    b2 = jax.random.uniform(k4, (2,), jnp.float32, -bound2, bound2)
    return w1, b1, w2, b2


def _reference(x, w1, b1, w2, b2):
    h = jnp.maximum(x @ w1 + b1, 0.0)
    return jax.nn.softmax(h @ w2 + b2, axis=1)


if __name__ == "__main__":
    key = jax.random.PRNGKey(0)
    kx, kp, kx2 = jax.random.split(key, 3)
    w1, b1, w2, b2 = init_params(kp)

    # Small batch consistent with the module (single grid step).
    batch = 8
    x = jax.random.normal(kx, (batch, 10), jnp.float32)
    out = jax.block_until_ready(classifier_forward(x, w1, b1, w2, b2))
    ref = _reference(x, w1, b1, w2, b2)
    assert out.shape == (batch, 2)
    assert jnp.allclose(out, ref, atol=1e-5, rtol=1e-5)
    assert jnp.allclose(jnp.sum(out, axis=1), 1.0, atol=1e-5)

    # Larger, non-multiple batch to exercise the tiled/padded multi-step grid path.
    batch2 = 1030
    x2 = jax.random.normal(kx2, (batch2, 10), jnp.float32)
    out2 = jax.block_until_ready(classifier_forward(x2, w1, b1, w2, b2))
    ref2 = _reference(x2, w1, b1, w2, b2)
    assert out2.shape == (batch2, 2)
    assert jnp.allclose(out2, ref2, atol=1e-5, rtol=1e-5)

    print("KERNEL_OK")
</pallas_src>

<mosaic_0001>
module attributes {stable_mosaic.version = 11 : i64} {
  func.func @classifier_kernel(%arg0: i32, %arg1: memref<8x10xf32, #tpu.memory_space<vmem>>, %arg2: memref<10x4xf32, #tpu.memory_space<vmem>>, %arg3: memref<1x4xf32, #tpu.memory_space<vmem>>, %arg4: memref<4x2xf32, #tpu.memory_space<vmem>>, %arg5: memref<1x2xf32, #tpu.memory_space<vmem>>, %arg6: memref<8x2xf32, #tpu.memory_space<vmem>>) attributes {dimension_semantics = [#tpu.dimension_semantics<parallel>], iteration_bounds = array<i64: 1>, scalar_prefetch = 0 : i64, scratch_operands = 0 : i64, tpu.core_type = #tpu.core_type<tc>, window_params = [{transform_indices = @transform_0, window_bounds = array<i64: 8, 10>}, {pipeline_mode = #tpu.pipeline_mode<synchronous>, transform_indices = @transform_1, window_bounds = array<i64: 10, 4>}, {pipeline_mode = #tpu.pipeline_mode<synchronous>, transform_indices = @transform_2, window_bounds = array<i64: 1, 4>}, {pipeline_mode = #tpu.pipeline_mode<synchronous>, transform_indices = @transform_3, window_bounds = array<i64: 4, 2>}, {pipeline_mode = #tpu.pipeline_mode<synchronous>, transform_indices = @transform_4, window_bounds = array<i64: 1, 2>}, {transform_indices = @transform_5, window_bounds = array<i64: 8, 2>}]} {
    %c0 = arith.constant 0 : index
    %c0_0 = arith.constant 0 : index
    %0 = vector.load %arg1[%c0, %c0_0] : memref<8x10xf32, #tpu.memory_space<vmem>>, vector<8x10xf32>
    %c0_1 = arith.constant 0 : index
    %c0_2 = arith.constant 0 : index
    %1 = vector.load %arg2[%c0_1, %c0_2] : memref<10x4xf32, #tpu.memory_space<vmem>>, vector<10x4xf32>
    %cst = arith.constant dense<0.000000e+00> : vector<8x4xf32>
    %2 = tpu.matmul %0, %1, %cst {dimension_numbers = #tpu.dot_dimension_numbers<[1], [0], [0], [1], [0, 0, 1, 1], [], []>} : vector<8x10xf32>, vector<10x4xf32>, vector<8x4xf32> -> vector<8x4xf32>
    %c0_3 = arith.constant 0 : index
    %c0_4 = arith.constant 0 : index
    %3 = vector.load %arg3[%c0_3, %c0_4] : memref<1x4xf32, #tpu.memory_space<vmem>>, vector<1x4xf32>
    %4 = vector.broadcast %3 : vector<1x4xf32> to vector<8x4xf32>
    %5 = arith.addf %2, %4 : vector<8x4xf32>
    %cst_5 = arith.constant 0.000000e+00 : f32
    %6 = vector.broadcast %cst_5 : f32 to vector<8x4xf32>
    %7 = arith.maximumf %5, %6 : vector<8x4xf32>
    %c0_6 = arith.constant 0 : index
    %c0_7 = arith.constant 0 : index
    %8 = vector.load %arg4[%c0_6, %c0_7] : memref<4x2xf32, #tpu.memory_space<vmem>>, vector<4x2xf32>
    %cst_8 = arith.constant dense<0.000000e+00> : vector<8x2xf32>
    %9 = tpu.matmul %7, %8, %cst_8 {dimension_numbers = #tpu.dot_dimension_numbers<[1], [0], [0], [1], [0, 0, 1, 1], [], []>} : vector<8x4xf32>, vector<4x2xf32>, vector<8x2xf32> -> vector<8x2xf32>
    %c0_9 = arith.constant 0 : index
    %c0_10 = arith.constant 0 : index
    %10 = vector.load %arg5[%c0_9, %c0_10] : memref<1x2xf32, #tpu.memory_space<vmem>>, vector<1x2xf32>
    %11 = vector.broadcast %10 : vector<1x2xf32> to vector<8x2xf32>
    %12 = arith.addf %9, %11 : vector<8x2xf32>
    %13 = vector.extract_strided_slice %12 {offsets = [0, 0], sizes = [8, 1], strides = [1, 1]} : vector<8x2xf32> to vector<8x1xf32>
    %14 = vector.extract_strided_slice %12 {offsets = [0, 1], sizes = [8, 1], strides = [1, 1]} : vector<8x2xf32> to vector<8x1xf32>
    %15 = arith.subf %13, %14 : vector<8x1xf32>
    %16 = math.exp %15 : vector<8x1xf32>
    %cst_11 = arith.constant 1.000000e+00 : f32
    %17 = vector.broadcast %cst_11 : f32 to vector<8x1xf32>
    %18 = arith.addf %17, %16 : vector<8x1xf32>
    %cst_12 = arith.constant 1.000000e+00 : f32
    %19 = vector.broadcast %cst_12 : f32 to vector<8x1xf32>
    %20 = arith.divf %19, %18 : vector<8x1xf32>
    %cst_13 = arith.constant 1.000000e+00 : f32
    %21 = vector.broadcast %cst_13 : f32 to vector<8x1xf32>
    %22 = arith.subf %21, %20 : vector<8x1xf32>
    %23 = tpu.concatenate %22, %20 in 1 : vector<8x1xf32>, vector<8x1xf32> -> vector<8x2xf32>
    %c0_14 = arith.constant 0 : index
    %c0_15 = arith.constant 0 : index
    %24 = vector.load %arg6[%c0_14, %c0_15] : memref<8x2xf32, #tpu.memory_space<vmem>>, vector<8x2xf32>
    tpu.vector_store %arg6[%c0_14, %c0_15], %23 {strides = array<i32>} : memref<8x2xf32, #tpu.memory_space<vmem>>, vector<8x2xf32>,
    return
  }
  func.func @transform_0(%arg0: i32) -> (i32, i32) {
    %c0_i32 = arith.constant 0 : i32
    %c0_i32_0 = arith.constant 0 : i32
    return %arg0, %c0_i32 : i32, i32
  }
  func.func @transform_1(%arg0: i32) -> (i32, i32) {
    %c0_i32 = arith.constant 0 : i32
    %c0_i32_0 = arith.constant 0 : i32
    %c0_i32_1 = arith.constant 0 : i32
    return %c0_i32, %c0_i32_0 : i32, i32
  }
  func.func @transform_2(%arg0: i32) -> (i32, i32) {
    %c0_i32 = arith.constant 0 : i32
    %c0_i32_0 = arith.constant 0 : i32
    %c0_i32_1 = arith.constant 0 : i32
    return %c0_i32, %c0_i32_0 : i32, i32
  }
  func.func @transform_3(%arg0: i32) -> (i32, i32) {
    %c0_i32 = arith.constant 0 : i32
    %c0_i32_0 = arith.constant 0 : i32
    %c0_i32_1 = arith.constant 0 : i32
    return %c0_i32, %c0_i32_0 : i32, i32
  }
  func.func @transform_4(%arg0: i32) -> (i32, i32) {
    %c0_i32 = arith.constant 0 : i32
    %c0_i32_0 = arith.constant 0 : i32
    %c0_i32_1 = arith.constant 0 : i32
    return %c0_i32, %c0_i32_0 : i32, i32
  }
  func.func @transform_5(%arg0: i32) -> (i32, i32) {
    %c0_i32 = arith.constant 0 : i32
    %c0_i32_0 = arith.constant 0 : i32
    return %arg0, %c0_i32 : i32, i32
  }
}

</mosaic_0001>

<bundles_post_ra>
// kernel: tpu_custom_call.1
= control target key start
LH: loop header
LB: loop body
LE: loop exit
PB: predicated region body
PF: predicated region fallthrough
CT: control target
= control target key end

     0   :  { %vm34_vm0 = vcmask 1041408   ;;  %v249_v0 = vmov 0.0   ;;  %vm250_vm1 = vmmov 0   ;;  %vm30_vm2 = vcmask 80896   ;;  %s304_s1 = inlined_call_operand.vmem [shape: f32[10,4], index: 1, kind: input, shape index: {}]   ;;  %s305_s0 = inlined_call_operand.vmem [shape: f32[8,10], index: 0, kind: input, shape index: {}]   ;;  %s306_s3 = inlined_call_operand.vmem [shape: f32[4,2], index: 3, kind: input, shape index: {}]   ;;  %s307_s2 = inlined_call_operand.vmem [shape: f32[1,4], index: 2, kind: input, shape index: {}]   ;;  %s308_s4 = inlined_call_operand.vmem [shape: f32[1,2], index: 4, kind: input, shape index: {}]   ;;  %s309_s5 = inlined_call_operand.vmem [shape: f32[8,2], index: 5, kind: output, shape index: {}]  }
   0x1   :  { %229 = vmatprep.subr.mxu0 %v249_v0  ;;  %v22_v1 = vld [vmem:[%s304_s1 + $0x8] sm:$0x3]  ;;  %v21_v2 = vld [vmem:[%s304_s1] sm:$0xff]  ;;  %233 = vmatprep.mubr.msk.f32.mxu0 %vm250_vm1, %v249_v0  ;;  %vm121_vm3 = vcmask 1043456   ;;  %vm117_vm4 = vcmask 31744   ;;  %vm210_vm5 = vcmask 7168  }
   0x2   :  { %230 = vmatpush3.msk.msra.mxu0 %vm34_vm0, %v22_v1  ;;  %v20_v3 = vld [vmem:[%s305_s0] sm:$0xff]  ;;  %236 = vmatprep.subr.mxu1 %v249_v0  ;;  %vm212_vm6 = vcmask 15360  }
   0x3   :  { %231 = vmatprep.subr.mxu0 %v249_v0  ;;  %238 = vmatprep.mubr.msk.f32.mxu1 %vm250_vm1, %v249_v0  ;;  %v109_v4 = vld [vmem:[%s306_s3] sm:$0xf]  ;;  %s251_s3 = smov 127  }
   0x4   :  { %232 = vmatpush3.msra.mxu0 %v21_v2  ;;  %237 = vmatpush3.msk.msra.mxu1 %vm121_vm3, %v109_v4  ;;  %v218_v5 = vld [vmem:[%s307_s2] ss:$0 sm:$0xff]  ;;  %s252_s2 = smov 1  }
   0x5   :  { %234 = vmatmul.mubr.msk.f32.vlgmr.msra.gmra.mxu0 %vm30_vm2, %v20_v3  ;;  %v221_v10 = vld [vmem:[%s308_s4] ss:$0 sm:$0xff] }
  0xc5   :  { %v104_v6 = vpop.f32.mrf.mxu0 }
  0xc6   :  { %v105_v7 = vadd.f32 %v218_v5, %v104_v6 }
  0xc7   :  { %v235_v8 = vpop.f32.mrf.mxu0 }
  0xc8   :  { %v108_v9 = vmax.f32 %v105_v7, 0.0 }
  0xca   :  { %239 = vmatmul.mubr.msk.f32.vlgmr.msra.gmra.mxu1 %vm117_vm4, %v108_v9 }
 0x18a   :  { %v191_v11 = vpop.f32.mrf.mxu1 }
 0x18b   :  { %v192_v12 = vadd.f32 %v221_v10, %v191_v11 }
 0x18c   :  { %v240_v13 = vpop.f32.mrf.mxu1 }
 0x18d   :  { %196 = vrot.lane.b32.xlu0 %v192_v12, %s251_s3 }
 0x1ff   :  { %v197_v14 = vpop.permute.xlu0 %196 }
 0x200   :  { %v199_v15 = vsub.f32 %v192_v12, %v197_v14 }
 0x202   :  { %v200_v16 = vmul.f32 1.442695, %v199_v15 }
 0x204   :  { %245 = vpow2.f32 %v200_v16 }
 0x211   :  { %v246_v17 = vpop.eup %245 }
 0x212   :  { %v202_v18 = vadd.f32 1.0, %v246_v17 }
 0x214   :  { %247 = vrcp.f32 %v202_v18 }
 0x221   :  { %v248_v19 = vpop.eup %247 }
 0x222   :  { %207 = vrot.lane.b32.xlu0 %v248_v19, %s252_s2  ;;  %v205_v20 = vsub.f32 1.0, %v248_v19 }
 0x294   :  { %v208_v21 = vpop.permute.xlu0 %207 }
 0x295   :  { %v211_v22 = vsel %vm210_vm5, %v205_v20, %v208_v21 }
 0x296   :  { %213 = vst.msk [vmem:[%s309_s5] sm:$0xff] %vm212_vm6, %v211_v22 }

</bundles_post_ra>
